<compile_context>
chip_gen: v7x
topology: tpu7x:2x2x1
jax: 0.10.0
libtpu: 0.0.40
codegen_flags: <defaults>
</compile_context>

<pallas_src>
import math
import numpy as np
import jax
import jax.numpy as jnp
from jax import lax
from jax.experimental import pallas as pl
from jax.experimental.pallas import tpu as pltpu

CROP_SIZE = 1.0 / 2  # module default


# ---------------- Pallas kernel ----------------

def _make_fused_kernel(inv_in, inv_out):
    """Masked-mean kernel. Grid = (row_blocks, k_blocks), contraction axis last.

    x_ref:   (tm, tk) tile of the flattened features, native dtype.
    w_ref:   (8, tk) tile of the 0/1 mask matrix (row 0 = inside mask,
             row 1 = outside mask, rows 2..7 zero padding so the MXU/result
             tiles stay sublane-aligned), same dtype as x.
    o_ref:   (2, tm) lane-dense output block (row 0 inside, row 1 outside).
    acc_ref: (8, tm) f32 accumulator scratch, persistent across the k axis.
    """

    def kernel(x_ref, w_ref, o_ref, acc_ref):
        k = pl.program_id(1)

        @pl.when(k == 0)
        def _init():
            acc_ref[...] = jnp.zeros_like(acc_ref)

        # (8, tk) x (tm, tk) contracted on tk -> (8, tm): transposed-rhs
        # matmul (same dimension numbers as q @ k^T in flash attention),
        # f32 MXU accumulation, operands stay in x's native dtype.
        acc_ref[...] += lax.dot_general(
            w_ref[...], x_ref[...],
            dimension_numbers=(((1,), (1,)), ((), ())),
            preferred_element_type=jnp.float32)

        @pl.when(k == pl.num_programs(1) - 1)
        def _finalize():
            # 0/1 mask weights -> apply the 1/N scaling on the f32 accumulator.
            o_ref[0:1, :] = (acc_ref[0:1, :] * inv_in).astype(o_ref.dtype)
            o_ref[1:2, :] = (acc_ref[1:2, :] * inv_out).astype(o_ref.dtype)

    return kernel


# ---------------- static index math & hardware queries ----------------

def _crop_bounds(H, W, crop_size):
    ch = (int(H / 2 - crop_size / 2 * H), int(H / 2 + crop_size / 2 * H))
    cw = (int(W / 2 - crop_size / 2 * W), int(W / 2 + crop_size / 2 * W))
    mask = np.zeros((H, W), dtype=bool)
    mask[ch[0]:ch[1], cw[0]:cw[1]] = True
    return ch, cw, mask


def _mask_indices(H, W, crop_size):
    # row-major == torch.where order (used by the numpy reference)
    _, _, mask = _crop_bounds(H, W, crop_size)
    flat = mask.reshape(-1)
    return mask, np.where(flat)[0], np.where(~flat)[0]


def _vmem_budget():
    """(physical_cap, scoped_limit, per-buffer budget), generation-aware."""
    cap = 64 * 1024 * 1024          # conservative default = v7x per-core physical
    try:
        info = pltpu.get_tpu_info()
        cap = int(getattr(info, "vmem_capacity_bytes", cap)) or cap
    except Exception:
        pass
    limit = min(cap * 3 // 4, 64 * 1024 * 1024)   # v7x ~48 MiB, v5e/v6e 64 MiB
    buf = max(4 * 1024 * 1024, limit // 3)        # input tile budget (double-buffered)
    return cap, limit, buf


def _num_tensorcores():
    try:
        kind = jax.devices()[0].device_kind.lower()
        if "v7" in kind or "v4" in kind:          # 2 TensorCores share the grid
            return 2
    except Exception:
        pass
    return 1


def _choose_tiles(BC, HW, itemsize, num_cores, buf_budget):
    """Row (tm) / contraction (tk) tiles for the (BC, HW) masked-mean matmul.

    * tm is BC (single block) or a multiple of 128, so the lane-dense (2, tm)
      output block is legal and bf16/int8 sublane packing is satisfied.
    * tk is HW, or (for very large rows) a multiple-of-128 divisor of HW so
      K-blocks never straddle padding.
    * tm is additionally capped so there are >= 2 row blocks per TensorCore
      (megacore sharding on v7x + DMA/compute overlap everywhere).
    """
    # --- contraction tile ---
    tk = HW
    if 128 * HW * itemsize > buf_budget and HW % 128 == 0:
        max_tk = max(128, (buf_budget // (128 * itemsize)) // 128 * 128)
        best = 128
        d = 128
        while d <= min(HW, max_tk):
            if HW % d == 0:
                best = d
            d += 128
        tk = best
    # TODO(synk): huge H*W that is not a multiple of 128 cannot be K-tiled
    # without padded (garbage) contraction blocks; such shapes fall back to a
    # single K block and may need more VMEM than the scoped limit.

    # --- row tile ---
    rows_fit = max(128, (buf_budget // max(1, tk * itemsize)) // 128 * 128)
    rows_target = max(1, -(-BC // (2 * max(1, num_cores))))     # >=2 blocks/core
    rows_target = max(128, ((rows_target + 127) // 128) * 128)
    tm = min(rows_fit, rows_target)
    if tm >= BC:
        tm = BC
    return tm, tk


# ---------------- forward ----------------

def surround_pattern(x, s=None, crop_size=CROP_SIZE):
    if not jnp.issubdtype(x.dtype, jnp.floating):
        x = x.astype(jnp.float32)          # torch .mean() requires floating input
    B, C, H, W = x.shape
    (ch0, ch1), (cw0, cw1), mask = _crop_bounds(H, W, crop_size)
    n_in = (ch1 - ch0) * (cw1 - cw0)
    n_out = H * W - n_in
    assert n_in > 0 and n_out > 0, "degenerate crop: empty inside/outside region"

    BC, HW = B * C, H * W
    itemsize = jnp.dtype(x.dtype).itemsize

    # 0/1 mask rows in x's dtype (exact); rows 2..7 are zero padding so the
    # MXU lhs / accumulator stay sublane-aligned. 1/N scaling is in-kernel.
    mflat = mask.reshape(-1).astype(np.float32)
    w_np = np.zeros((8, HW), dtype=np.float32)
    w_np[0] = mflat
    w_np[1] = 1.0 - mflat
    w = jnp.asarray(w_np, dtype=x.dtype)                      # (8, HW)

    x2 = x.reshape(BC, HW)                                    # native dtype, no copy

    cap, limit, buf_budget = _vmem_budget()
    num_cores = _num_tensorcores()
    tm, tk = _choose_tiles(BC, HW, itemsize, num_cores, buf_budget)

    tile_bytes = tm * tk * itemsize
    needed = (2 * tile_bytes                # double-buffered x tile
              + 2 * 8 * tk * itemsize      # weight blocks
              + 2 * 2 * tm * itemsize      # output blocks
              + 8 * tm * 4                 # f32 accumulator scratch
              + (2 << 20))                 # slack
    vmem_limit = int(min(cap, max(limit, needed)))

    grid = (pl.cdiv(BC, tm), pl.cdiv(HW, tk))                 # rows parallel, K last
    cost = pl.CostEstimate(
        flops=2 * 8 * BC * HW,
        transcendentals=0,
        bytes_accessed=BC * HW * itemsize + 8 * HW * itemsize + 2 * BC * itemsize)

    out2 = pl.pallas_call(
        _make_fused_kernel(1.0 / n_in, 1.0 / n_out),
        out_shape=jax.ShapeDtypeStruct((2, BC), x.dtype),
        grid=grid,
        in_specs=[pl.BlockSpec((tm, tk), lambda i, k: (i, k)),   # features
                  pl.BlockSpec((8, tk), lambda i, k: (0, k))],   # mask weight (resident)
        out_specs=pl.BlockSpec((2, tm), lambda i, k: (0, i)),    # lane-dense output
        scratch_shapes=[pltpu.VMEM((8, tm), jnp.float32)],
        compiler_params=pltpu.CompilerParams(
            dimension_semantics=("parallel", "arbitrary"),
            vmem_limit_bytes=vmem_limit),
        cost_estimate=cost,
    )(x2, w)

    # Tiny (2, BC) -> (B, C, 2, 1) transpose/reshape; keeps the kernel output
    # lane-dense. Output stays in x.dtype (torch semantics); accumulation was f32.
    fused = out2.T.reshape(B, C, 2, 1)

    if s is None:
        return fused

    # ---------------- saliency path (XLA, per perf review) ----------------
    SB, SC, SH, SW = s.shape
    (sh0, sh1), (sw0, sw1), _ = _crop_bounds(SH, SW, crop_size)

    # Inside: contiguous rectangle -> static slice; row-major flatten matches
    # torch.where ordering exactly (channel-major, row-major within channel).
    inside_sal = s[:, :, sh0:sh1, sw0:sw1].reshape(SB, -1)                  # (B, L)

    # Outside: complement assembled from rectangular bands in row-major order
    # (top rows, [left | right] of middle rows, bottom rows) -- no gathers.
    top = s[:, :, :sh0, :].reshape(SB, SC, -1)
    mid = jnp.concatenate([s[:, :, sh0:sh1, :sw0],
                           s[:, :, sh0:sh1, sw1:]], axis=3).reshape(SB, SC, -1)
    bot = s[:, :, sh1:, :].reshape(SB, SC, -1)
    outside_sal = jnp.concatenate([top, mid, bot], axis=2).reshape(SB, -1)  # (B, Lo)

    L = inside_sal.shape[1]
    Lo = outside_sal.shape[1]

    if Lo == L:
        pooled = outside_sal
    elif Lo % L == 0:
        # adaptive_max_pool1d with Lo = k*L has contiguous size-k windows:
        # direct last-axis reduce, no transpose / extra HBM copy.
        pooled = jnp.max(outside_sal.reshape(SB, L, Lo // L), axis=2)
    else:
        # General adaptive windows: window i = [floor(i*Lo/L), ceil((i+1)*Lo/L)).
        starts = [(i * Lo) // L for i in range(L)]
        ends = [math.ceil((i + 1) * Lo / L) for i in range(L)]
        wmax = max(e - st for st, e in zip(starts, ends))
        idx = np.zeros((L, wmax), dtype=np.int32)
        valid = np.zeros((L, wmax), dtype=bool)
        for i in range(L):
            kk = ends[i] - starts[i]
            idx[i, :kk] = np.arange(starts[i], ends[i])
            valid[i, :kk] = True
        gath = outside_sal[:, idx]                                          # (B, L, wmax)
        neg = jnp.asarray(-jnp.inf, dtype=outside_sal.dtype)
        gath = jnp.where(jnp.asarray(valid)[None, :, :], gath, neg)
        pooled = jnp.max(gath, axis=2)

    fused_sal = jnp.stack([inside_sal, pooled], axis=2)[..., None]          # (B, L, 2, 1)
    return fused, fused_sal


# ---------------- numpy reference (mirrors the PyTorch forward) ----------------

def _reference(x, s, crop_size=CROP_SIZE):
    x = np.asarray(x, dtype=np.float32)
    B, C, H, W = x.shape
    _, in_idx, out_idx = _mask_indices(H, W, crop_size)
    xf = x.reshape(B, C, H * W)
    inside_feat = xf[:, :, in_idx].mean(2)
    outside_feat = xf[:, :, out_idx].mean(2)
    fused = np.stack([inside_feat, outside_feat], axis=2)[..., None]
    if s is None:
        return fused, None

    s = np.asarray(s, dtype=np.float32)
    SB, SC, SH, SW = s.shape
    _, sin, sout = _mask_indices(SH, SW, crop_size)
    sf = s.reshape(SB, SC, SH * SW)
    inside_sal = sf[:, :, sin].reshape(SB, -1)
    outside_sal = sf[:, :, sout].reshape(SB, -1)
    L, Lo = inside_sal.shape[1], outside_sal.shape[1]
    if Lo != L:
        pooled = np.empty((SB, L), np.float32)
        for i in range(L):
            st = (i * Lo) // L
            en = math.ceil((i + 1) * Lo / L)
            pooled[:, i] = outside_sal[:, st:en].max(1)
        outside_sal = pooled
    fused_sal = np.stack([inside_sal, outside_sal], axis=2)[..., None]
    return fused, fused_sal


if __name__ == "__main__":
    key = jax.random.PRNGKey(0)
    k1, k2, k3 = jax.random.split(key, 3)

    # Test 1: module-default small shapes (feature map + saliency map).
    x = jax.random.normal(k1, (2, 4, 16, 16), dtype=jnp.float32)
    s = jax.random.uniform(k2, (2, 1, 16, 16), dtype=jnp.float32)
    fused, fused_sal = surround_pattern(x, s)
    jax.block_until_ready((fused, fused_sal))
    ref_fused, ref_sal = _reference(x, s)
    np.testing.assert_allclose(np.asarray(fused), ref_fused, rtol=1e-5, atol=1e-5)
    np.testing.assert_allclose(np.asarray(fused_sal), ref_sal, rtol=1e-5, atol=1e-5)

    # Test 2: larger B*C so the row grid has multiple blocks (exercises the
    # resident-weight / lane-dense tiling + accumulator path); s=None branch.
    x2 = jax.random.normal(k3, (4, 64, 16, 16), dtype=jnp.float32)
    fused2 = surround_pattern(x2, None)
    jax.block_until_ready(fused2)
    ref_fused2, _ = _reference(x2, None)
    np.testing.assert_allclose(np.asarray(fused2), ref_fused2, rtol=1e-5, atol=1e-5)

    print("KERNEL_OK")
</pallas_src>

<mosaic_0001>
module attributes {stable_mosaic.version = 11 : i64} {
  func.func @kernel(%arg0: i32, %arg1: i32, %arg2: memref<8x256xf32, #tpu.memory_space<vmem>>, %arg3: memref<8x256xf32, #tpu.memory_space<vmem>>, %arg4: memref<2x8xf32, #tpu.memory_space<vmem>>, %arg5: memref<8x8xf32, #tpu.memory_space<vmem>>) attributes {dimension_semantics = [#tpu.dimension_semantics<parallel>, #tpu.dimension_semantics<arbitrary>], iteration_bounds = array<i64: 1, 1>, scalar_prefetch = 0 : i64, scratch_operands = 1 : i64, tpu.core_type = #tpu.core_type<tc>, window_params = [{transform_indices = @transform_0, window_bounds = array<i64: 8, 256>}, {transform_indices = @transform_1, window_bounds = array<i64: 8, 256>}, {transform_indices = @transform_2, window_bounds = array<i64: 2, 8>}]} {
    %c0_i32 = arith.constant 0 : i32
    %0 = arith.cmpi eq, %arg1, %c0_i32 : i32
    %1 = arith.extui %0 : i1 to i32
    %c0_i32_0 = arith.constant 0 : i32
    %2 = arith.cmpi ne, %1, %c0_i32_0 : i32
    scf.if %2 {
      %cst_10 = arith.constant 0.000000e+00 : f32
      %12 = vector.broadcast %cst_10 : f32 to vector<8x8xf32>
      %c0_11 = arith.constant 0 : index
      %c0_12 = arith.constant 0 : index
      %13 = vector.load %arg5[%c0_11, %c0_12] : memref<8x8xf32, #tpu.memory_space<vmem>>, vector<8x8xf32>
      tpu.vector_store %arg5[%c0_11, %c0_12], %12 {strides = array<i32>} : memref<8x8xf32, #tpu.memory_space<vmem>>, vector<8x8xf32>,
    } else {
    }
    %c0 = arith.constant 0 : index
    %c0_1 = arith.constant 0 : index
    %3 = vector.load %arg5[%c0, %c0_1] : memref<8x8xf32, #tpu.memory_space<vmem>>, vector<8x8xf32>
    %c0_2 = arith.constant 0 : index
    %c0_3 = arith.constant 0 : index
    %4 = vector.load %arg3[%c0_2, %c0_3] : memref<8x256xf32, #tpu.memory_space<vmem>>, vector<8x256xf32>
    %c0_4 = arith.constant 0 : index
    %c0_5 = arith.constant 0 : index
    %5 = vector.load %arg2[%c0_4, %c0_5] : memref<8x256xf32, #tpu.memory_space<vmem>>, vector<8x256xf32>
    %cst = arith.constant dense<0.000000e+00> : vector<8x8xf32>
    %6 = tpu.matmul %4, %5, %cst {dimension_numbers = #tpu.dot_dimension_numbers<[1], [1], [0], [0], [0, 0, 1, 0], [], []>} : vector<8x256xf32>, vector<8x256xf32>, vector<8x8xf32> -> vector<8x8xf32>
    %7 = arith.addf %3, %6 : vector<8x8xf32>
    %c0_6 = arith.constant 0 : index
    %c0_7 = arith.constant 0 : index
    %8 = vector.load %arg5[%c0_6, %c0_7] : memref<8x8xf32, #tpu.memory_space<vmem>>, vector<8x8xf32>
    tpu.vector_store %arg5[%c0_6, %c0_7], %7 {strides = array<i32>} : memref<8x8xf32, #tpu.memory_space<vmem>>, vector<8x8xf32>,
    %c0_i32_8 = arith.constant 0 : i32
    %9 = arith.cmpi eq, %arg1, %c0_i32_8 : i32
    %10 = arith.extui %9 : i1 to i32
    %c0_i32_9 = arith.constant 0 : i32
    %11 = arith.cmpi ne, %10, %c0_i32_9 : i32
    scf.if %11 {
      %c0_10 = arith.constant 0 : index
      %c0_11 = arith.constant 0 : index
      %12 = vector.load %arg5[%c0_10, %c0_11] : memref<8x8xf32, #tpu.memory_space<vmem>>, vector<1x8xf32>
      %cst_12 = arith.constant 1.562500e-02 : f32
      %13 = vector.broadcast %cst_12 : f32 to vector<1x8xf32>
      %14 = arith.mulf %12, %13 : vector<1x8xf32>
      %c0_13 = arith.constant 0 : index
      %c0_14 = arith.constant 0 : index
      %15 = vector.load %arg4[%c0_13, %c0_14] : memref<2x8xf32, #tpu.memory_space<vmem>>, vector<1x8xf32>
      tpu.vector_store %arg4[%c0_13, %c0_14], %14 {strides = array<i32>} : memref<2x8xf32, #tpu.memory_space<vmem>>, vector<1x8xf32>,
      %c1 = arith.constant 1 : index
      %c0_15 = arith.constant 0 : index
      %16 = vector.load %arg5[%c1, %c0_15] : memref<8x8xf32, #tpu.memory_space<vmem>>, vector<1x8xf32>
      %cst_16 = arith.constant 0.00520833349 : f32
      %17 = vector.broadcast %cst_16 : f32 to vector<1x8xf32>
      %18 = arith.mulf %16, %17 : vector<1x8xf32>
      %c1_17 = arith.constant 1 : index
      %c0_18 = arith.constant 0 : index
      %19 = vector.load %arg4[%c1_17, %c0_18] : memref<2x8xf32, #tpu.memory_space<vmem>>, vector<1x8xf32>
      tpu.vector_store %arg4[%c1_17, %c0_18], %18 {strides = array<i32>} : memref<2x8xf32, #tpu.memory_space<vmem>>, vector<1x8xf32>,
    } else {
    }
    return
  }
  func.func @transform_0(%arg0: i32, %arg1: i32) -> (i32, i32) {
    %c0_i32 = arith.constant 0 : i32
    return %arg0, %arg1 : i32, i32
  }
  func.func @transform_1(%arg0: i32, %arg1: i32) -> (i32, i32) {
    %c0_i32 = arith.constant 0 : i32
    %c0_i32_0 = arith.constant 0 : i32
    return %c0_i32, %arg1 : i32, i32
  }
  func.func @transform_2(%arg0: i32, %arg1: i32) -> (i32, i32) {
    %c0_i32 = arith.constant 0 : i32
    %c0_i32_0 = arith.constant 0 : i32
    return %c0_i32, %arg0 : i32, i32
  }
}

</mosaic_0001>

<bundles_post_ra>
// kernel: tpu_custom_call.1
= control target key start
LH: loop header
LB: loop body
LE: loop exit
PB: predicated region body
PF: predicated region fallthrough
CT: control target
= control target key end

     0   :  { %7 = vsyncpa [#allocation4], 0  ;;  %s277_s0 = inlined_call_operand.hbm [shape: f32[8,256], index: 0, kind: input, shape index: {}]   ;;  %s278_s1 = inlined_call_operand.hbm [shape: f32[8,256], index: 1, kind: input, shape index: {}]   ;;  %s279_s2 = inlined_call_operand.hbm [shape: f32[2,8], index: 2, kind: output, shape index: {}]  }
   0x1   :  { %8 = vsyncpa [#allocation7], 0 }
   0x2   :  { %9 = vsyncpa [#allocation5], 0  ;;  %s222_s9 = smov [#allocation3]   ;;  %s223_s11 = smov [#allocation6]  }
   0x3   :  { %s16_s10 = sshll.u32 %s222_s9, 4  ;;  %s26_s12 = sshll.u32 %s223_s11, 4  ;;  %s17_s10 = int_to_ptr.vmem [resolvable:$true] %s16_s10  ;;  %s27_s12 = int_to_ptr.vmem [resolvable:$true] %s26_s12 }
   0x4   :  { %s150_s15 = scalar_lea.hbm %s277_s0, 256 }
   0x5   :  { %p151_p0 = scmp.ne.s32.totalorder %s277_s0, %s150_s15  ;;  %p154_p1 = scmp.lt.u32.totalorder %s150_s15, %s277_s0 }
   0x7   :  { %p156_p2 = pnand %p154_p1, %p151_p0 }
   0x9   :  { %159 = shalt.err (!%p156_p2)
}
   0xa   :  { %s160_s20 = scalar_lea.vmem %s17_s10, 256  ;;  %p165_p4 = scmp.lt.s32.totalorder %s17_s10, %s17_s10 }
   0xb   :  { %p161_p3 = scmp.ne.s32.totalorder %s17_s10, %s160_s20  ;;  %p166_p5 = scmp.lt.s32.totalorder %s160_s20, %s160_s20 }
   0xd   :  { %p167_p6 = por %p166_p5, %p165_p4 }
   0xf   :  { %p168_p7 = pnand %p167_p6, %p161_p3 }
  0x11   :  { %171 = shalt.err (!%p168_p7)
}
  0x12   :  { %19 = dma.hbm_to_vmem [thread:$0]  %s277_s0, 256, %s17_s10, [#allocation4]  }
  0x13   :  { %s172_s25 = scalar_lea.hbm %s278_s1, 256 }
  0x14   :  { %p173_p8 = scmp.ne.s32.totalorder %s278_s1, %s172_s25  ;;  %p176_p9 = scmp.lt.u32.totalorder %s172_s25, %s278_s1 }
  0x16   :  { %p178_p10 = pnand %p176_p9, %p173_p8 }
  0x18   :  { %181 = shalt.err (!%p178_p10)
}
  0x19   :  { %s182_s30 = scalar_lea.vmem %s27_s12, 256  ;;  %p187_p12 = scmp.lt.s32.totalorder %s27_s12, %s27_s12 }
  0x1a   :  { %p183_p11 = scmp.ne.s32.totalorder %s27_s12, %s182_s30  ;;  %p188_p13 = scmp.lt.s32.totalorder %s182_s30, %s182_s30 }
  0x1c   :  { %p189_p0 = por %p188_p13, %p187_p12 }
  0x1e   :  { %p190_p1 = pnand %p189_p0, %p183_p11 }
  0x20   :  { %193 = shalt.err (!%p190_p1)
}
  0x21   :  { %29 = dma.hbm_to_vmem [thread:$0]  %s278_s1, 256, %s27_s12, [#allocation7]  }
  0x22   :  { %216 = dma.done.wait [#allocation4], 256  }
  0x23   :  { %217 = vsyncadd [#allocation4], 4294967040 }
  0x24   :  { %218 = dma.done.wait [#allocation7], 256  }
  0x25   :  { %219 = vsyncadd [#allocation7], 4294967040  ;;  %vm40_vm0 = vcmask 64512   ;;  %v224_v0 = vmov 0.0   ;;  %v46_v1 = vld [vmem:[#allocation3 + $0x8] sm:$0xff]  ;;  %v45_v2 = vld [vmem:[#allocation3] sm:$0xff] }
  0x26   :  { %41 = vst.msk [vmem:[#allocation2] sm:$0xff] %vm40_vm0, %v224_v0  ;;  %v44_v3 = vld [vmem:[#allocation6 + $0x8] sm:$0xff]  ;;  %47 = vmatprep.subr.mxu0 %v46_v1  ;;  %v43_v4 = vld [vmem:[#allocation6] sm:$0xff]  ;;  %s225_s1 = smov [#allocation8]   ;;  %vm125_vm1 = vcmask 57344  }
  0x27   :  { %111 = vmatprep.mubr.f32.mxu0 %v44_v3  ;;  %48 = vmatpush1.xpose.msra.mxu0 %v45_v2  ;;  %s136_s4 = sshll.u32 %s225_s1, 4  ;;  %s137_s4 = int_to_ptr.vmem [resolvable:$true] %s136_s4 }
  0x28   :  { %s194_s5 = scalar_lea.vmem %s137_s4, 32  ;;  %p199_p3 = scmp.lt.s32.totalorder %s137_s4, %s137_s4 }
  0x29   :  { %p195_p2 = scmp.ne.s32.totalorder %s137_s4, %s194_s5  ;;  %p200_p4 = scmp.lt.s32.totalorder %s194_s5, %s194_s5 }
  0x2a   :  { %112 = vmatmul.mubr.f32.vlgmr.msra.gmra.mrb[0].mxu0 %v43_v4 }
  0x2b   :  { %p201_p5 = por %p200_p4, %p199_p3 }
  0x2d   :  { %v42_v5 = vld [vmem:[#allocation2] sm:$0xff]  ;;  %p202_p6 = pnand %p201_p5, %p195_p2 }
  0xfd   :  { %v113_v6 = vpop.f32.mrb[0].mxu0 }
  0xfe   :  { %v117_v7 = vadd.f32 %v113_v6, %v42_v5  ;;  %v115_v8 = vpop.f32.mrb[1].mxu0 }
 0x100   :  { %119 = vst.msk [vmem:[#allocation2] sm:$0xff] %vm40_vm0, %v117_v7 }
 0x107   :  { %v123_v9 = vld [vmem:[#allocation2] sm:$0x1]  ;;  %v127_v10 = vld [vmem:[#allocation2 + $0x1] sm:$0x1] }
 0x108   :  { %v124_v11 = vmul.f32 0.015625, %v123_v9  ;;  %v128_v12 = vmul.f32 0.0052083335, %v127_v10 }
 0x10a   :  { %126 = vst.msk [vmem:[#allocation8] sm:$0x1] %vm125_vm1, %v124_v11  ;;  %129 = vst.msk [vmem:[#allocation8 + $0x1] sm:$0x1] %vm125_vm1, %v128_v12 }
 0x10b   :  { %205 = shalt.err (!%p202_p6)
}
 0x10c   :  { %s206_s8 = scalar_lea.hbm %s279_s2, 32 }
 0x10d   :  { %p207_p7 = scmp.ne.s32.totalorder %s279_s2, %s206_s8  ;;  %p210_p8 = scmp.lt.u32.totalorder %s206_s8, %s279_s2 }
 0x10f   :  { %p212_p9 = pnand %p210_p8, %p207_p7 }
 0x111   :  { %215 = shalt.err (!%p212_p9)
}
 0x112   :  { %139 = dma.vmem_to_hbm [thread:$0]  %s137_s4, 32, %s279_s2, [#allocation5]  }
 0x113   :  { %220 = dma.done.wait [#allocation5], 32  }
 0x114   :  { %221 = vsyncadd [#allocation5], 4294967264 }
 0x115   :  { %143 = vsyncpa [#allocation4], 1 }
 0x116   :  { %144 = vsyncpa [#allocation7], 1 }
 0x117   :  { %145 = vsyncpa [#allocation5], 1 }

</bundles_post_ra>
